<compile_context>
chip_gen: v7x
topology: tpu7x:2x2x1
jax: 0.10.0
libtpu: 0.0.40
codegen_flags: <defaults>
</compile_context>

<pallas_src>
import jax
import jax.numpy as jnp
from jax.experimental import pallas as pl
from jax.experimental.pallas import tpu as pltpu


def _choose_row_tile(L, block_size, target=128, cap=1024):
    """Row tile T: multiple of block_size, divides L, lane/MXU friendly, <= cap."""
    if L <= target:
        return L                      # single tile; block dims equal the full array dims
    if block_size >= target:
        return block_size             # the block itself is already MXU/lane sized
    cands = [t for t in range(block_size, min(L, cap) + 1, block_size) if L % t == 0]
    for t in cands:                   # smallest 128-multiple >= target (lane dense, aligned store)
        if t >= target and t % 128 == 0:
            return t
    c128 = [t for t in cands if t % 128 == 0]
    if c128:
        return max(c128)
    c8 = [t for t in cands if t % 8 == 0]
    if c8:
        return max(c8)                # sublane aligned; column store may be masked but correct
    # TODO(synk): no aligned divisor of L; fall back to one dense row tile.
    return L


def _choose_head_fuse(BH, T, L, E, D, in_itemsize, attn_itemsize,
                      budget_bytes=12 << 20, g_max=8):
    """Largest divisor G of B*H whose double-buffered blocks fit the VMEM budget."""
    best = 1
    for g in range(1, min(BH, g_max) + 1):
        if BH % g:
            continue
        blocks = g * T * (2 * E * in_itemsize + 2 * D * in_itemsize + L * attn_itemsize)
        if 2 * blocks + T * T * 4 <= budget_bytes:
            best = g
    return best


def sparse_attention(queries, keys, values, *, block_size, row_tile=None,
                     head_fuse=None, prefer_bf16_mxu=False):
    """Pallas implementation of SparseAttention.forward (mask=None).

    queries: (B, L, H, E), keys: (B, S, H, E), values: (B, S, H, D), S == L.
    Returns (output (B, L, H, D), attn (B, H, L, L)).
    """
    B, L, H, E = queries.shape
    _, S, _, D = values.shape
    assert S == L, "keys/values sequence length must match queries"
    assert L % block_size == 0, "Sequence length should be divisible by block size"

    T = row_tile if row_tile is not None else _choose_row_tile(L, block_size)
    assert L % T == 0 and T % block_size == 0
    nT = L // T
    BH = B * H

    in_dtype = queries.dtype
    attn_dtype = in_dtype                       # softmax keeps the input floating dtype
    mxu_dtype = (jnp.bfloat16
                 if (prefer_bf16_mxu and in_dtype == jnp.float32) else in_dtype)

    G = head_fuse if head_fuse is not None else _choose_head_fuse(
        BH, T, L, E, D,
        jnp.dtype(in_dtype).itemsize, jnp.dtype(attn_dtype).itemsize)
    assert BH % G == 0

    # head-major, fused batch/head: (B, L, H, X) -> (B*H, L, X)
    q = jnp.transpose(queries, (0, 2, 1, 3)).reshape(BH, L, E)
    k = jnp.transpose(keys, (0, 2, 1, 3)).reshape(BH, L, E)
    v = jnp.transpose(values, (0, 2, 1, 3)).reshape(BH, L, D)

    # Block-diagonal additive bias for one (T, T) tile.  T % block_size == 0,
    # so every row tile sees the identical pattern -> one resident bias.
    idx = jnp.arange(T)
    in_block = (idx[:, None] // block_size) == (idx[None, :] // block_size)
    bias = jnp.where(in_block, 0.0, -1e30).astype(jnp.float32)

    def kernel(bias_ref, q_ref, k_ref, v_ref, o_ref, a_ref):
        # q_ref/k_ref: (G, T, E); v_ref: (G, T, D)
        # o_ref: (G, T, D); a_ref: (G, T, L) row slab of the dense attention
        q_t = q_ref[...].astype(mxu_dtype)
        k_t = k_ref[...].astype(mxu_dtype)
        # scores[g, l, s] = sum_e q[g, l, e] * k[g, s, e]  (no 1/sqrt(E); matches torch)
        scores = jax.lax.dot_general(
            q_t, k_t, dimension_numbers=(((2,), (2,)), ((0,), (0,))),
            preferred_element_type=jnp.float32)          # (G, T, T), no k.T transpose
        scores = scores + bias_ref[...]                  # 0 in-block, -1e30 off-block

        m = jnp.max(scores, axis=-1, keepdims=True)
        p = jnp.exp(scores - m)
        denom = jnp.sum(p, axis=-1, keepdims=True)
        attn = p * pl.reciprocal(denom, approx=True)     # EUP reciprocal + VPU multiply

        out = jax.lax.dot_general(
            attn.astype(mxu_dtype), v_ref[...].astype(mxu_dtype),
            dimension_numbers=(((2,), (1,)), ((0,), (0,))),
            preferred_element_type=jnp.float32)          # (G, T, D)
        o_ref[...] = out.astype(o_ref.dtype)

        # Write the dense attention row slab: zeros off the diagonal block,
        # the (G, T, T) softmax tile at column offset j*T (aligned when T%128==0).
        if nT == 1:
            a_ref[...] = attn.astype(a_ref.dtype)
        else:
            a_ref[...] = jnp.zeros_like(a_ref)
            col = pl.multiple_of(pl.program_id(1) * T, T)
            a_ref[:, :, pl.ds(col, T)] = attn.astype(a_ref.dtype)

    out_bh, attn_bh = pl.pallas_call(
        kernel,
        out_shape=(
            jax.ShapeDtypeStruct((BH, L, D), in_dtype),
            jax.ShapeDtypeStruct((BH, L, L), attn_dtype),
        ),
        grid_spec=pltpu.PrefetchScalarGridSpec(
            num_scalar_prefetch=0,
            grid=(BH // G, nT),
            in_specs=[
                pl.BlockSpec((T, T), lambda i, j: (0, 0)),        # bias (resident)
                pl.BlockSpec((G, T, E), lambda i, j: (i, j, 0)),  # Q row tile (G heads)
                pl.BlockSpec((G, T, E), lambda i, j: (i, j, 0)),  # K diagonal band
                pl.BlockSpec((G, T, D), lambda i, j: (i, j, 0)),  # V diagonal band
            ],
            out_specs=[
                pl.BlockSpec((G, T, D), lambda i, j: (i, j, 0)),  # output
                pl.BlockSpec((G, T, L), lambda i, j: (i, j, 0)),  # dense attn row slab
            ],
        ),
        compiler_params=pltpu.CompilerParams(
            dimension_semantics=("parallel", "parallel"),
            vmem_limit_bytes=32 * 1024 * 1024,
        ),
    )(bias, q, k, v)

    output = jnp.transpose(out_bh.reshape(B, H, L, D), (0, 2, 1, 3))   # (B, L, H, D)
    attn = attn_bh.reshape(B, H, L, L)
    return output, attn


def _reference_sparse_attention(queries, keys, values, *, block_size):
    qf = queries.astype(jnp.float32)
    kf = keys.astype(jnp.float32)
    vf = values.astype(jnp.float32)
    B, L, H, E = qf.shape
    scores = jnp.einsum("blhe,bshe->bhls", qf, kf)
    idx = jnp.arange(L)
    block_mask = (idx[:, None] // block_size) == (idx[None, :] // block_size)
    scores = jnp.where(block_mask[None, None, :, :], scores, -jnp.inf)
    attn = jax.nn.softmax(scores, axis=-1)
    output = jnp.einsum("bhls,bshd->blhd", attn, vf)
    return output, attn


if __name__ == "__main__":
    key = jax.random.PRNGKey(0)

    # Test 1: small single-tile case (T == L == 16).
    B, L, H, E, D = 2, 16, 2, 32, 32
    bs = 4
    kq, kk, kv = jax.random.split(key, 3)
    q1 = jax.random.normal(kq, (B, L, H, E), dtype=jnp.float32)
    k1 = jax.random.normal(kk, (B, L, H, E), dtype=jnp.float32)
    v1 = jax.random.normal(kv, (B, L, H, D), dtype=jnp.float32)

    out1, attn1 = sparse_attention(q1, k1, v1, block_size=bs)
    jax.block_until_ready((out1, attn1))
    ro1, ra1 = _reference_sparse_attention(q1, k1, v1, block_size=bs)
    assert out1.shape == (B, L, H, D) and attn1.shape == (B, H, L, L)
    assert jnp.allclose(out1, ro1, atol=2e-2, rtol=2e-2)
    assert jnp.allclose(attn1, ra1, atol=1e-2)

    # Test 2: tiled path (L=512 -> T=128, nT=4) with head fusion and the
    # dense-attention dynamic column store.
    B2, L2, H2, E2, D2 = 1, 512, 2, 32, 32
    bs2 = 8
    kq2, kk2, kv2 = jax.random.split(jax.random.PRNGKey(1), 3)
    q2 = jax.random.normal(kq2, (B2, L2, H2, E2), dtype=jnp.float32)
    k2 = jax.random.normal(kk2, (B2, L2, H2, E2), dtype=jnp.float32)
    v2 = jax.random.normal(kv2, (B2, L2, H2, D2), dtype=jnp.float32)

    out2, attn2 = sparse_attention(q2, k2, v2, block_size=bs2)
    jax.block_until_ready((out2, attn2))
    ro2, ra2 = _reference_sparse_attention(q2, k2, v2, block_size=bs2)
    assert jnp.allclose(out2, ro2, atol=2e-2, rtol=2e-2)
    assert jnp.allclose(attn2, ra2, atol=1e-2)

    # Test 3: bf16-MXU fast path for f32 inputs (looser tolerance, compared
    # against a reference computed on bf16-rounded inputs).
    out3, attn3 = sparse_attention(q2, k2, v2, block_size=bs2, prefer_bf16_mxu=True)
    jax.block_until_ready((out3, attn3))
    ro3, ra3 = _reference_sparse_attention(
        q2.astype(jnp.bfloat16), k2.astype(jnp.bfloat16), v2.astype(jnp.bfloat16),
        block_size=bs2)
    assert jnp.allclose(out3, ro3, atol=5e-2, rtol=5e-2)
    assert jnp.allclose(attn3, ra3, atol=3e-2)

    print("KERNEL_OK")
</pallas_src>

<mosaic_0001>
module attributes {stable_mosaic.version = 11 : i64} {
  func.func @kernel(%arg0: i32, %arg1: i32, %arg2: memref<16x16xf32, #tpu.memory_space<vmem>>, %arg3: memref<4x16x32xf32, #tpu.memory_space<vmem>>, %arg4: memref<4x16x32xf32, #tpu.memory_space<vmem>>, %arg5: memref<4x16x32xf32, #tpu.memory_space<vmem>>, %arg6: memref<4x16x32xf32, #tpu.memory_space<vmem>>, %arg7: memref<4x16x16xf32, #tpu.memory_space<vmem>>) attributes {dimension_semantics = [#tpu.dimension_semantics<parallel>, #tpu.dimension_semantics<parallel>], iteration_bounds = array<i64: 1, 1>, scalar_prefetch = 0 : i64, scratch_operands = 0 : i64, tpu.core_type = #tpu.core_type<tc>, window_params = [{pipeline_mode = #tpu.pipeline_mode<synchronous>, transform_indices = @transform_0, window_bounds = array<i64: 16, 16>}, {transform_indices = @transform_1, window_bounds = array<i64: 4, 16, 32>}, {transform_indices = @transform_2, window_bounds = array<i64: 4, 16, 32>}, {transform_indices = @transform_3, window_bounds = array<i64: 4, 16, 32>}, {transform_indices = @transform_4, window_bounds = array<i64: 4, 16, 32>}, {transform_indices = @transform_5, window_bounds = array<i64: 4, 16, 16>}]} {
    %c0 = arith.constant 0 : index
    %c0_0 = arith.constant 0 : index
    %c0_1 = arith.constant 0 : index
    %0 = vector.load %arg3[%c0, %c0_0, %c0_1] : memref<4x16x32xf32, #tpu.memory_space<vmem>>, vector<4x16x32xf32>
    %c0_2 = arith.constant 0 : index
    %c0_3 = arith.constant 0 : index
    %c0_4 = arith.constant 0 : index
    %1 = vector.load %arg4[%c0_2, %c0_3, %c0_4] : memref<4x16x32xf32, #tpu.memory_space<vmem>>, vector<4x16x32xf32>
    %cst = arith.constant dense<0.000000e+00> : vector<4x16x16xf32>
    %2 = tpu.matmul %0, %1, %cst {dimension_numbers = #tpu.dot_dimension_numbers<[2], [2], [1], [1], [0, 0, 0, 1, 1, 1], [0], [0]>} : vector<4x16x32xf32>, vector<4x16x32xf32>, vector<4x16x16xf32> -> vector<4x16x16xf32>
    %c0_5 = arith.constant 0 : index
    %c0_6 = arith.constant 0 : index
    %3 = vector.load %arg2[%c0_5, %c0_6] : memref<16x16xf32, #tpu.memory_space<vmem>>, vector<16x16xf32>
    %4 = vector.shape_cast %3 : vector<16x16xf32> to vector<1x16x16xf32>
    %5 = vector.broadcast %4 : vector<1x16x16xf32> to vector<4x16x16xf32>
    %6 = arith.addf %2, %5 : vector<4x16x16xf32>
    %cst_7 = arith.constant dense<0xFF800000> : vector<4x16xf32>
    %7 = vector.multi_reduction <maximumf>, %6, %cst_7 [2] : vector<4x16x16xf32> to vector<4x16xf32>
    %8 = vector.shape_cast %7 : vector<4x16xf32> to vector<4x16x1xf32>
    %9 = vector.broadcast %8 : vector<4x16x1xf32> to vector<4x16x16xf32>
    %10 = arith.subf %6, %9 : vector<4x16x16xf32>
    %11 = math.exp %10 : vector<4x16x16xf32>
    %cst_8 = arith.constant dense<0.000000e+00> : vector<4x16xf32>
    %12 = vector.multi_reduction <add>, %11, %cst_8 [2] : vector<4x16x16xf32> to vector<4x16xf32>
    %13 = vector.shape_cast %12 : vector<4x16xf32> to vector<4x16x1xf32>
    %14 = tpu.reciprocal %13 {approx = true} : vector<4x16x1xf32> -> vector<4x16x1xf32>
    %15 = vector.broadcast %14 : vector<4x16x1xf32> to vector<4x16x16xf32>
    %16 = arith.mulf %11, %15 : vector<4x16x16xf32>
    %c0_9 = arith.constant 0 : index
    %c0_10 = arith.constant 0 : index
    %c0_11 = arith.constant 0 : index
    %17 = vector.load %arg5[%c0_9, %c0_10, %c0_11] : memref<4x16x32xf32, #tpu.memory_space<vmem>>, vector<4x16x32xf32>
    %cst_12 = arith.constant dense<0.000000e+00> : vector<4x16x32xf32>
    %18 = tpu.matmul %16, %17, %cst_12 {dimension_numbers = #tpu.dot_dimension_numbers<[2], [1], [1], [2], [0, 0, 0, 1, 1, 2], [0], [0]>} : vector<4x16x16xf32>, vector<4x16x32xf32>, vector<4x16x32xf32> -> vector<4x16x32xf32>
    %c0_13 = arith.constant 0 : index
    %c0_14 = arith.constant 0 : index
    %c0_15 = arith.constant 0 : index
    %19 = vector.load %arg6[%c0_13, %c0_14, %c0_15] : memref<4x16x32xf32, #tpu.memory_space<vmem>>, vector<4x16x32xf32>
    tpu.vector_store %arg6[%c0_13, %c0_14, %c0_15], %18 {strides = array<i32>} : memref<4x16x32xf32, #tpu.memory_space<vmem>>, vector<4x16x32xf32>,
    %c0_16 = arith.constant 0 : index
    %c0_17 = arith.constant 0 : index
    %c0_18 = arith.constant 0 : index
    %20 = vector.load %arg7[%c0_16, %c0_17, %c0_18] : memref<4x16x16xf32, #tpu.memory_space<vmem>>, vector<4x16x16xf32>
    tpu.vector_store %arg7[%c0_16, %c0_17, %c0_18], %16 {strides = array<i32>} : memref<4x16x16xf32, #tpu.memory_space<vmem>>, vector<4x16x16xf32>,
    return
  }
  func.func @transform_0(%arg0: i32, %arg1: i32) -> (i32, i32) {
    %c0_i32 = arith.constant 0 : i32
    %c0_i32_0 = arith.constant 0 : i32
    %c0_i32_1 = arith.constant 0 : i32
    return %c0_i32, %c0_i32_0 : i32, i32
  }
  func.func @transform_1(%arg0: i32, %arg1: i32) -> (i32, i32, i32) {
    %c0_i32 = arith.constant 0 : i32
    %c0_i32_0 = arith.constant 0 : i32
    return %arg0, %arg1, %c0_i32 : i32, i32, i32
  }
  func.func @transform_2(%arg0: i32, %arg1: i32) -> (i32, i32, i32) {
    %c0_i32 = arith.constant 0 : i32
    %c0_i32_0 = arith.constant 0 : i32
    return %arg0, %arg1, %c0_i32 : i32, i32, i32
  }
  func.func @transform_3(%arg0: i32, %arg1: i32) -> (i32, i32, i32) {
    %c0_i32 = arith.constant 0 : i32
    %c0_i32_0 = arith.constant 0 : i32
    return %arg0, %arg1, %c0_i32 : i32, i32, i32
  }
  func.func @transform_4(%arg0: i32, %arg1: i32) -> (i32, i32, i32) {
    %c0_i32 = arith.constant 0 : i32
    %c0_i32_0 = arith.constant 0 : i32
    return %arg0, %arg1, %c0_i32 : i32, i32, i32
  }
  func.func @transform_5(%arg0: i32, %arg1: i32) -> (i32, i32, i32) {
    %c0_i32 = arith.constant 0 : i32
    %c0_i32_0 = arith.constant 0 : i32
    return %arg0, %arg1, %c0_i32 : i32, i32, i32
  }
}

</mosaic_0001>

<bundles_post_ra>
// kernel: tpu_custom_call.1
= control target key start
LH: loop header
LB: loop body
LE: loop exit
PB: predicated region body
PF: predicated region fallthrough
CT: control target
= control target key end

     0   :  { %11 = vsyncpa [#allocation3], 0  ;;  %s1481_s0 = inlined_call_operand.hbm [shape: f32[16,16], index: 0, kind: input, shape index: {}]   ;;  %s1482_s1 = inlined_call_operand.hbm [shape: f32[4,16,32], index: 1, kind: input, shape index: {}]   ;;  %s1483_s2 = inlined_call_operand.hbm [shape: f32[4,16,32], index: 2, kind: input, shape index: {}]   ;;  %s1484_s3 = inlined_call_operand.hbm [shape: f32[4,16,32], index: 3, kind: input, shape index: {}]   ;;  %s1485_s4 = inlined_call_operand.hbm [shape: f32[4,16,32], index: 4, kind: output, shape index: {0}]   ;;  %s1486_s5 = inlined_call_operand.hbm [shape: f32[4,16,16], index: 5, kind: output, shape index: {1}]  }
   0x1   :  { %12 = vsyncpa [#allocation6], 0 }
   0x2   :  { %13 = vsyncpa [#allocation9], 0 }
   0x3   :  { %14 = vsyncpa [#allocation4], 0 }
   0x4   :  { %15 = vsyncpa [#allocation12], 0  ;;  %s1249_s18 = smov [#allocation5]   ;;  %s1250_s20 = smov [#allocation2]  }
   0x5   :  { %s33_s19 = sshll.u32 %s1249_s18, 4  ;;  %s21_s21 = sshll.u32 %s1250_s20, 4  ;;  %s34_s19 = int_to_ptr.vmem [resolvable:$true] %s33_s19  ;;  %s1287_s21 = int_to_ptr.vmem [resolvable:$true] %s21_s21 }
   0x6   :  { %s1107_s24 = scalar_lea.hbm %s1482_s1, 1024 }
   0x7   :  { %p1108_p0 = scmp.ne.s32.totalorder %s1482_s1, %s1107_s24  ;;  %p1111_p1 = scmp.lt.u32.totalorder %s1107_s24, %s1482_s1 }
   0x9   :  { %p1113_p2 = pnand %p1111_p1, %p1108_p0 }
   0xb   :  { %1116 = shalt.err (!%p1113_p2)
}
   0xc   :  { %s1117_s29 = scalar_lea.vmem %s34_s19, 1024  ;;  %p1122_p4 = scmp.lt.s32.totalorder %s34_s19, %s34_s19 }
   0xd   :  { %p1118_p3 = scmp.ne.s32.totalorder %s34_s19, %s1117_s29  ;;  %p1123_p5 = scmp.lt.s32.totalorder %s1117_s29, %s1117_s29 }
   0xf   :  { %p1124_p6 = por %p1123_p5, %p1122_p4 }
  0x11   :  { %p1125_p7 = pnand %p1124_p6, %p1118_p3 }
  0x13   :  { %1128 = shalt.err (!%p1125_p7)
}
  0x14   :  { %s1251_s30 = smov 128   ;;  %s1252_s6 = smov 8  }
  0x15   :  { %39 = dma.hbm_to_vmem [thread:$0]  %s1482_s1, 1024, %s34_s19, [#allocation6], %s1251_s30, %s1251_s30, %s1252_s6  }
  0x16   :  { %s1129_s11 = scalar_lea.hbm %s1481_s0, 256 }
  0x17   :  { %p1130_p8 = scmp.ne.s32.totalorder %s1481_s0, %s1129_s11  ;;  %p1133_p9 = scmp.lt.u32.totalorder %s1129_s11, %s1481_s0 }
  0x19   :  { %p1135_p10 = pnand %p1133_p9, %p1130_p8 }
  0x1b   :  { %1138 = shalt.err (!%p1135_p10)
}
  0x1c   :  { %s1139_s16 = scalar_lea.vmem %s1287_s21, 256  ;;  %p1144_p12 = scmp.lt.s32.totalorder %s1287_s21, %s1287_s21 }
  0x1d   :  { %p1140_p11 = scmp.ne.s32.totalorder %s1287_s21, %s1139_s16  ;;  %p1145_p13 = scmp.lt.s32.totalorder %s1139_s16, %s1139_s16 }
  0x1f   :  { %p1146_p0 = por %p1145_p13, %p1144_p12 }
  0x21   :  { %p1147_p1 = pnand %p1146_p0, %p1140_p11 }
  0x23   :  { %1150 = shalt.err (!%p1147_p1)
}
  0x24   :  { %27 = dma.hbm_to_vmem [thread:$0]  %s1481_s0, 256, %s1287_s21, [#allocation3], %s1251_s30, %s1251_s30, %s1252_s6  }
  0x25   :  { %s1253_s18 = smov [#allocation7]   ;;  %s1254_s20 = smov [#allocation8]  }
  0x26   :  { %s45_s19 = sshll.u32 %s1253_s18, 4  ;;  %s57_s22 = sshll.u32 %s1254_s20, 4  ;;  %s46_s19 = int_to_ptr.vmem [resolvable:$true] %s45_s19  ;;  %s1324_s22 = int_to_ptr.vmem [resolvable:$true] %s57_s22 }
  0x27   :  { %s1151_s25 = scalar_lea.hbm %s1483_s2, 1024 }
  0x28   :  { %p1152_p2 = scmp.ne.s32.totalorder %s1483_s2, %s1151_s25  ;;  %p1155_p3 = scmp.lt.u32.totalorder %s1151_s25, %s1483_s2 }
  0x2a   :  { %p1157_p4 = pnand %p1155_p3, %p1152_p2 }
  0x2c   :  { %1160 = shalt.err (!%p1157_p4)
}
  0x2d   :  { %s1161_s0 = scalar_lea.vmem %s46_s19, 1024  ;;  %p1166_p6 = scmp.lt.s32.totalorder %s46_s19, %s46_s19 }
  0x2e   :  { %p1162_p5 = scmp.ne.s32.totalorder %s46_s19, %s1161_s0  ;;  %p1167_p7 = scmp.lt.s32.totalorder %s1161_s0, %s1161_s0 }
  0x30   :  { %p1168_p8 = por %p1167_p7, %p1166_p6 }
  0x32   :  { %p1169_p9 = pnand %p1168_p8, %p1162_p5 }
  0x34   :  { %1172 = shalt.err (!%p1169_p9)
}
  0x35   :  { %51 = dma.hbm_to_vmem [thread:$0]  %s1483_s2, 1024, %s46_s19, [#allocation6], %s1251_s30, %s1251_s30, %s1252_s6  }
  0x36   :  { %s1173_s10 = scalar_lea.hbm %s1484_s3, 1024 }
  0x37   :  { %p1174_p10 = scmp.ne.s32.totalorder %s1484_s3, %s1173_s10  ;;  %p1177_p11 = scmp.lt.u32.totalorder %s1173_s10, %s1484_s3 }
  0x39   :  { %p1179_p12 = pnand %p1177_p11, %p1174_p10 }
  0x3b   :  { %1182 = shalt.err (!%p1179_p12)
}
  0x3c   :  { %s1183_s15 = scalar_lea.vmem %s1324_s22, 1024  ;;  %p1188_p0 = scmp.lt.s32.totalorder %s1324_s22, %s1324_s22 }
  0x3d   :  { %p1184_p13 = scmp.ne.s32.totalorder %s1324_s22, %s1183_s15  ;;  %p1189_p1 = scmp.lt.s32.totalorder %s1183_s15, %s1183_s15 }
  0x3f   :  { %p1190_p2 = por %p1189_p1, %p1188_p0 }
  0x41   :  { %p1191_p3 = pnand %p1190_p2, %p1184_p13 }
  0x43   :  { %1194 = shalt.err (!%p1191_p3)
}
  0x44   :  { %63 = dma.hbm_to_vmem [thread:$0]  %s1484_s3, 1024, %s1324_s22, [#allocation9], %s1251_s30, %s1251_s30, %s1252_s6  }
  0x45   :  { %1239 = dma.done.wait [#allocation3], 256  }
  0x46   :  { %1240 = vsyncadd [#allocation3], 4294967040 }
  0x47   :  { %1241 = dma.done.wait [#allocation6], 2048  }
  0x48   :  { %1242 = vsyncadd [#allocation6], 4294965248 }
  0x49   :  { %1243 = dma.done.wait [#allocation9], 1024  }
  0x4a   :  { %1244 = vsyncadd [#allocation9], 4294966272  ;;  %vm94_vm0 = vcmask 261120   ;;  %v84_v1 = vld [vmem:[#allocation7] sm:$0xff]  ;;  %v85_v2 = vld [vmem:[#allocation7 + $0x8] sm:$0xff]  ;;  %vm443_vm2 = vcmask 130048  }
  0x4b   :  { %vm1363_vm1 = vmpackc.low %vm94_vm0, %vm94_vm0  ;;  %v86_v3 = vld [vmem:[#allocation7 + $0x10] sm:$0xff]  ;;  %v1027_v4 = vpack.c.bf16 %v85_v2, %v84_v1  ;;  %v87_v5 = vld [vmem:[#allocation7 + $0x18] sm:$0xff]  ;;  %s1255_s3 = smov [#allocation11]  }
  0x4c   :  { %v76_v6 = vld [vmem:[#allocation5] sm:$0xff]  ;;  %v1033_v7 = vpack.c.bf16 %v87_v5, %v86_v3  ;;  %v78_v8 = vld [vmem:[#allocation5 + $0x10] sm:$0xff]  ;;  %v89_v10 = vld [vmem:[#allocation7 + $0x28] sm:$0xff]  ;;  %s897_s1 = sshll.u32 %s1255_s3, 4  ;;  %s898_s1 = int_to_ptr.vmem [resolvable:$true] %s897_s1 }
  0x4d   :  { %975 = vmatprep.mubr.msk.f32.mxu0 %vm94_vm0, %v76_v6  ;;  %v88_v9 = vld [vmem:[#allocation7 + $0x20] sm:$0xff]  ;;  %1029 = vmatprep.subr.msk.bf16.mxu0 %vm1363_vm1, %v1027_v4  ;;  %v90_v12 = vld [vmem:[#allocation7 + $0x30] sm:$0xff]  ;;  %v91_v13 = vld [vmem:[#allocation7 + $0x38] sm:$0xff]  ;;  %s1195_s17 = scalar_lea.vmem %s898_s1, 1024  ;;  %p1200_p5 = scmp.lt.s32.totalorder %s898_s1, %s898_s1 }
  0x4e   :  { %982 = vmatprep.mubr.msk.f32.mxu1 %vm94_vm0, %v78_v8  ;;  %v1039_v11 = vpack.c.bf16 %v89_v10, %v88_v9  ;;  %1035 = vmatprep.subr.msk.bf16.mxu1 %vm1363_vm1, %v1033_v7  ;;  %v1045_v14 = vpack.c.bf16 %v91_v13, %v90_v12  ;;  %v77_v15 = vld [vmem:[#allocation5 + $0x8] sm:$0xff]  ;;  %v79_v16 = vld [vmem:[#allocation5 + $0x18] sm:$0xff]  ;;  %v80_v17 = vld [vmem:[#allocation5 + $0x20] sm:$0xff]  ;;  %p1196_p4 = scmp.ne.s32.totalorder %s898_s1, %s1195_s17  ;;  %p1201_p6 = scmp.lt.s32.totalorder %s1195_s17, %s1195_s17 }
  0x4f   :  { %1032 = vmatpush3.bf16.xpose.msk.msra.mxu0 %vm1363_vm1, %v1027_v4  ;;  %1038 = vmatpush3.bf16.xpose.msk.msra.mxu1 %vm1363_vm1, %v1033_v7  ;;  %v82_v18 = vld [vmem:[#allocation5 + $0x30] sm:$0xff]  ;;  %v81_v19 = vld [vmem:[#allocation5 + $0x28] sm:$0xff]  ;;  %v83_v20 = vld [vmem:[#allocation5 + $0x38] sm:$0xff] }
  0x50   :  { %1041 = vmatprep.subr.msk.bf16.mxu0 %vm1363_vm1, %v1039_v11  ;;  %1047 = vmatprep.subr.msk.bf16.mxu1 %vm1363_vm1, %v1045_v14  ;;  %v93_v21 = vld [vmem:[#allocation2 + $0x8] sm:$0xff]  ;;  %v92_v22 = vld [vmem:[#allocation2] sm:$0xff]  ;;  %p1202_p7 = por %p1201_p6, %p1200_p5 }
  0x52   :  { %p1203_p8 = pnand %p1202_p7, %p1196_p4 }
  0x56   :  { %976 = vmatmul.mubr.msk.f32.vlgmr.msra.gmra.mrb[0].mxu0 %vm94_vm0, %v77_v15  ;;  %983 = vmatmul.mubr.msk.f32.vlgmr.msra.gmra.mrb[0].mxu1 %vm94_vm0, %v79_v16 }
  0x57   :  { %1044 = vmatpush3.bf16.xpose.msk.msra.mxu0 %vm1363_vm1, %v1039_v11  ;;  %1050 = vmatpush3.bf16.xpose.msk.msra.mxu1 %vm1363_vm1, %v1045_v14 }
  0x58   :  { %989 = vmatprep.mubr.msk.f32.mxu0 %vm94_vm0, %v80_v17  ;;  %996 = vmatprep.mubr.msk.f32.mxu1 %vm94_vm0, %v82_v18 }
  0x5e   :  { %990 = vmatmul.mubr.msk.f32.vlgmr.msra.gmra.mrb[2].mxu0 %vm94_vm0, %v81_v19  ;;  %997 = vmatmul.mubr.msk.f32.vlgmr.msra.gmra.mrb[2].mxu1 %vm94_vm0, %v83_v20 }
 0x129   :  { %v977_v23 = vpop.f32.mrb[0].mxu0  ;;  %v984_v26 = vpop.f32.mrb[0].mxu1 }
 0x12a   :  { %v179_v24 = vadd.f32 %v977_v23, %v93_v21  ;;  %v173_v25 = vpop.f32.mrb[1].mxu0  ;;  %v266_v28 = vadd.f32 %v984_v26, %v93_v21  ;;  %v260_v29 = vpop.f32.mrb[1].mxu1  ;;  %v532_v23 = vld [vmem:[#allocation8] sm:$0xff]  ;;  %v534_v26 = vld [vmem:[#allocation8 + $0x10] sm:$0xff] }
 0x12b   :  { %v174_v27 = vadd.f32 %v173_v25, %v92_v22  ;;  %v261_v30 = vadd.f32 %v260_v29, %v92_v22  ;;  %v536_v29 = vld [vmem:[#allocation8 + $0x20] sm:$0xff] }
 0x12c   :  { %v447_v31 = vsel %vm443_vm2, %v179_v24, -inf  ;;  %v453_v33 = vsel %vm443_vm2, %v266_v28, -inf }
 0x12d   :  { %448 = vmax.xlane.f32.xlu1 %v447_v31  ;;  %v444_v32 = vsel %vm443_vm2, %v174_v27, -inf  ;;  %v450_v34 = vsel %vm443_vm2, %v261_v30, -inf }
 0x12e   :  { %445 = vmax.xlane.f32.xlu0 %v444_v32  ;;  %v538_v32 = vld [vmem:[#allocation8 + $0x30] sm:$0xff] }
 0x131   :  { %454 = vmax.xlane.f32.xlu1 %v453_v33  ;;  %v991_v35 = vpop.f32.mrb[2].mxu0  ;;  %v998_v36 = vpop.f32.mrb[2].mxu1  ;;  %v539_v33 = vld [vmem:[#allocation8 + $0x38] sm:$0xff] }
 0x132   :  { %v347_v37 = vpop.f32.mrb[3].mxu0  ;;  %451 = vmax.xlane.f32.xlu0 %v450_v34  ;;  %v434_v39 = vpop.f32.mrb[3].mxu1  ;;  %v353_v41 = vadd.f32 %v991_v35, %v93_v21  ;;  %v440_v43 = vadd.f32 %v998_v36, %v93_v21  ;;  %v1063_v34 = vpack.c.bf16 %v539_v33, %v538_v32 }
 0x133   :  { %v348_v38 = vadd.f32 %v347_v37, %v92_v22  ;;  %v435_v40 = vadd.f32 %v434_v39, %v92_v22 }
 0x134   :  { %v459_v45 = vsel %vm443_vm2, %v353_v41, -inf  ;;  %v465_v46 = vsel %vm443_vm2, %v440_v43, -inf }
 0x135   :  { %v456_v42 = vsel %vm443_vm2, %v348_v38, -inf  ;;  %v462_v44 = vsel %vm443_vm2, %v435_v40, -inf }
 0x136   :  { %457 = vmax.xlane.f32.xlu0 %v456_v42  ;;  %463 = vmax.xlane.f32.xlu1 %v462_v44 }
 0x13a   :  { %460 = vmax.xlane.f32.xlu0 %v459_v45  ;;  %466 = vmax.xlane.f32.xlu1 %v465_v46 }
 0x1ba   :  { %v449_v47 = vpop.xlane.xlu1 %448 }
 0x1bb   :  { %v469_v48 = vsub.f32 %v179_v24, %v449_v47  ;;  %v446_v49 = vpop.xlane.xlu0 %445  ;;  %v533_v24 = vld [vmem:[#allocation8 + $0x8] sm:$0xff] }
 0x1bc   :  { %v468_v50 = vsub.f32 %v174_v27, %v446_v49  ;;  %v1051_v25 = vpack.c.bf16 %v533_v24, %v532_v23  ;;  %v535_v27 = vld [vmem:[#allocation8 + $0x18] sm:$0xff] }
 0x1bd   :  { %v478_v51 = vmul.f32 1.442695, %v469_v48 }
 0x1be   :  { %v476_v52 = vmul.f32 1.442695, %v468_v50  ;;  %v455_v53 = vpop.xlane.xlu1 %454  ;;  %1052 = vmatprep.subr.bf16.mxu0 %v1051_v25 }
 0x1bf   :  { %1075 = vpow2.f32 %v478_v51  ;;  %v471_v54 = vsub.f32 %v266_v28, %v455_v53  ;;  %v452_v55 = vpop.xlane.xlu0 %451  ;;  %1054 = vmatpush3.bf16.msra.mxu0 %v1051_v25  ;;  %v1055_v28 = vpack.c.bf16 %v535_v27, %v534_v26 }
 0x1c0   :  { %v470_v56 = vsub.f32 %v261_v30, %v452_v55  ;;  %1077 = vpow2.f32 %v476_v52  ;;  %v537_v30 = vld [vmem:[#allocation8 + $0x28] sm:$0xff] }
 0x1c1   :  { %v482_v57 = vmul.f32 1.442695, %v471_v54  ;;  %1056 = vmatprep.subr.bf16.mxu1 %v1055_v28  ;;  %v1059_v31 = vpack.c.bf16 %v537_v30, %v536_v29 }
 0x1c2   :  { %v480_v58 = vmul.f32 1.442695, %v470_v56  ;;  %1058 = vmatpush3.bf16.msra.mxu1 %v1055_v28 }
 0x1c3   :  { %1079 = vpow2.f32 %v482_v57  ;;  %v458_v59 = vpop.xlane.xlu0 %457  ;;  %v464_v60 = vpop.xlane.xlu1 %463  ;;  %1060 = vmatprep.subr.bf16.mxu0 %v1059_v31  ;;  %1064 = vmatprep.subr.bf16.mxu1 %v1063_v34 }
 0x1c4   :  { %v472_v61 = vsub.f32 %v348_v38, %v458_v59  ;;  %1081 = vpow2.f32 %v480_v58  ;;  %v474_v62 = vsub.f32 %v435_v40, %v464_v60 }
 0x1c6   :  { %v484_v63 = vmul.f32 1.442695, %v472_v61  ;;  %v488_v0 = vmul.f32 1.442695, %v474_v62 }
 0x1c7   :  { %v461_v1 = vpop.xlane.xlu0 %460  ;;  %v467_v2 = vpop.xlane.xlu1 %466 }
 0x1c8   :  { %1083 = vpow2.f32 %v484_v63  ;;  %v473_v3 = vsub.f32 %v353_v41, %v461_v1  ;;  %v475_v5 = vsub.f32 %v440_v43, %v467_v2 }
 0x1c9   :  { %v1076_v4 = vpop.eup %1075  ;;  %1085 = vpow2.f32 %v488_v0 }
 0x1ca   :  { %v486_v6 = vmul.f32 1.442695, %v473_v3  ;;  %v495_v7 = vsel %vm443_vm2, %v1076_v4, 0.0  ;;  %v1400_v8 = vpop.eup %1077  ;;  %v490_v9 = vmul.f32 1.442695, %v475_v5 }
 0x1cb   :  { %496 = vadd.xlane.f32.xlu0 %v495_v7  ;;  %v492_v12 = vsel %vm443_vm2, %v1400_v8, 0.0 }
 0x1cc   :  { %1087 = vpow2.f32 %v486_v6 }
 0x1cd   :  { %v1080_v10 = vpop.eup %1079  ;;  %1089 = vpow2.f32 %v490_v9 }
 0x1ce   :  { %v501_v11 = vsel %vm443_vm2, %v1080_v10, 0.0  ;;  %v1405_v13 = vpop.eup %1081 }
 0x1cf   :  { %502 = vadd.xlane.f32.xlu1 %v501_v11  ;;  %493 = vadd.xlane.f32.xlu0 %v492_v12  ;;  %v498_v15 = vsel %vm443_vm2, %v1405_v13, 0.0 }
 0x1d2   :  { %v1084_v14 = vpop.eup %1083 }
 0x1d3   :  { %v1409_v16 = vpop.eup %1085  ;;  %499 = vadd.xlane.f32.xlu1 %v498_v15  ;;  %v504_v17 = vsel %vm443_vm2, %v1084_v14, 0.0 }
 0x1d4   :  { %505 = vadd.xlane.f32.xlu0 %v504_v17  ;;  %v510_v19 = vsel %vm443_vm2, %v1409_v16, 0.0 }
 0x1d6   :  { %v1412_v18 = vpop.eup %1087 }
 0x1d7   :  { %v1416_v20 = vpop.eup %1089  ;;  %511 = vadd.xlane.f32.xlu1 %v510_v19  ;;  %v507_v21 = vsel %vm443_vm2, %v1412_v18, 0.0 }
 0x1d8   :  { %508 = vadd.xlane.f32.xlu0 %v507_v21  ;;  %v513_v22 = vsel %vm443_vm2, %v1416_v20, 0.0 }
 0x1db   :  { %514 = vadd.xlane.f32.xlu1 %v513_v22 }
 0x258   :  { %v497_v35 = vpop.xlane.xlu0 %496 }
 0x259   :  { %1091 = vrcp.f32 %v497_v35 }
 0x25c   :  { %v503_v36 = vpop.xlane.xlu1 %502  ;;  %v494_v37 = vpop.xlane.xlu0 %493 }
 0x25d   :  { %1093 = vrcp.f32 %v503_v36 }
 0x25e   :  { %1095 = vrcp.f32 %v494_v37 }
 0x260   :  { %v500_v38 = vpop.xlane.xlu1 %499 }
 0x261   :  { %1097 = vrcp.f32 %v500_v38  ;;  %v506_v39 = vpop.xlane.xlu0 %505 }
 0x262   :  { %1099 = vrcp.f32 %v506_v39 }
 0x263   :  { %v1092_v40 = vpop.eup %1091 }
 0x264   :  { %v525_v41 = vmul.f32 %v1092_v40, %v1076_v4  ;;  %v512_v42 = vpop.xlane.xlu1 %511 }
 0x265   :  { %1101 = vrcp.f32 %v512_v42  ;;  %v509_v43 = vpop.xlane.xlu0 %508 }
 0x266   :  { %873 = vst.msk [vmem:[#allocation11 + $0x8] sm:$0xff] %vm443_vm2, %v525_v41  ;;  %1103 = vrcp.f32 %v509_v43 }
 0x267   :  { %v1094_v44 = vpop.eup %1093 }
 0x268   :  { %v1096_v45 = vpop.eup %1095  ;;  %v527_v46 = vmul.f32 %v1094_v44, %v1080_v10  ;;  %v515_v47 = vpop.xlane.xlu1 %514 }
 0x269   :  { %1105 = vrcp.f32 %v515_v47  ;;  %v524_v48 = vmul.f32 %v1096_v45, %v1400_v8 }
 0x26a   :  { %875 = vst.msk [vmem:[#allocation11 + $0x18] sm:$0xff] %vm443_vm2, %v527_v46 }
 0x26b   :  { %v1098_v49 = vpop.eup %1097  ;;  %1003 = vmatprep.mubr.msk.f32.mxu0 %vm443_vm2, %v524_v48  ;;  %872 = vst.msk [vmem:[#allocation11] sm:$0xff] %vm443_vm2, %v524_v48 }
 0x26c   :  { %v1100_v50 = vpop.eup %1099  ;;  %1004 = vmatmul.mubr.msk.f32.vlgmr.msra.gmra.mrb[4].mxu0 %vm443_vm2, %v525_v41  ;;  %v526_v51 = vmul.f32 %v1098_v49, %v1405_v13 }
 0x26d   :  { %v528_v52 = vmul.f32 %v1100_v50, %v1084_v14  ;;  %1062 = vmatpush3.bf16.msra.mxu0 %v1059_v31 }
 0x26e   :  { %1010 = vmatprep.mubr.msk.f32.mxu1 %vm443_vm2, %v526_v51  ;;  %874 = vst.msk [vmem:[#allocation11 + $0x10] sm:$0xff] %vm443_vm2, %v526_v51 }
 0x26f   :  { %v1102_v53 = vpop.eup %1101  ;;  %1011 = vmatmul.mubr.msk.f32.vlgmr.msra.gmra.mrb[4].mxu1 %vm443_vm2, %v527_v46  ;;  %1017 = vmatprep.mubr.msk.f32.mxu0 %vm443_vm2, %v528_v52  ;;  %876 = vst.msk [vmem:[#allocation11 + $0x20] sm:$0xff] %vm443_vm2, %v528_v52 }
 0x270   :  { %v1104_v54 = vpop.eup %1103  ;;  %1066 = vmatpush3.bf16.msra.mxu1 %v1063_v34  ;;  %v530_v55 = vmul.f32 %v1102_v53, %v1409_v16 }
 0x271   :  { %v529_v56 = vmul.f32 %v1104_v54, %v1412_v18 }
 0x272   :  { %1024 = vmatprep.mubr.msk.f32.mxu1 %vm443_vm2, %v530_v55  ;;  %878 = vst.msk [vmem:[#allocation11 + $0x30] sm:$0xff] %vm443_vm2, %v530_v55 }
 0x273   :  { %v1106_v57 = vpop.eup %1105  ;;  %877 = vst.msk [vmem:[#allocation11 + $0x28] sm:$0xff] %vm443_vm2, %v529_v56  ;;  %1018 = vmatmul.mubr.msk.f32.vlgmr.msra.gmra.mrb[6].mxu0 %vm443_vm2, %v529_v56 }
 0x274   :  { %v531_v58 = vmul.f32 %v1106_v57, %v1416_v20 }
 0x276   :  { %879 = vst.msk [vmem:[#allocation11 + $0x38] sm:$0xff] %vm443_vm2, %v531_v58  ;;  %1025 = vmatmul.mubr.msk.f32.vlgmr.msra.gmra.mrb[6].mxu1 %vm443_vm2, %v531_v58 }
 0x277   :  { %1206 = shalt.err (!%p1203_p8)
}
 0x278   :  { %s1207_s20 = scalar_lea.hbm %s1486_s5, 1024 }
 0x279   :  { %p1208_p9 = scmp.ne.s32.totalorder %s1486_s5, %s1207_s20  ;;  %p1211_p10 = scmp.lt.u32.totalorder %s1207_s20, %s1486_s5 }
 0x27b   :  { %p1213_p11 = pnand %p1211_p10, %p1208_p9 }
 0x27d   :  { %1216 = shalt.err (!%p1213_p11)
}
 0x27e   :  { %903 = dma.vmem_to_hbm [thread:$0]  %s898_s1, 1024, %s1486_s5, [#allocation12], %s1251_s30, %s1251_s30, %s1252_s6  }
 0x27f   :  { %s1256_s28 = smov [#allocation10]  }
 0x280   :  { %s885_s29 = sshll.u32 %s1256_s28, 4  ;;  %s886_s29 = int_to_ptr.vmem [resolvable:$true] %s885_s29 }
 0x281   :  { %s1217_s5 = scalar_lea.vmem %s886_s29, 1024  ;;  %p1222_p13 = scmp.lt.s32.totalorder %s886_s29, %s886_s29 }
 0x282   :  { %p1218_p12 = scmp.ne.s32.totalorder %s886_s29, %s1217_s5  ;;  %p1223_p0 = scmp.lt.s32.totalorder %s1217_s5, %s1217_s5 }
 0x284   :  { %p1224_p1 = por %p1223_p0, %p1222_p13 }
 0x286   :  { %p1225_p2 = pnand %p1224_p1, %p1218_p12 }
 0x33f   :  { %v1005_v59 = vpop.f32.mrb[4].mxu0 }
 0x340   :  { %865 = vst.msk [vmem:[#allocation10 + $0x8] sm:$0xff] %vm94_vm0, %v1005_v59  ;;  %v612_v60 = vpop.f32.mrb[5].mxu0 }
 0x341   :  { %864 = vst.msk [vmem:[#allocation10] sm:$0xff] %vm94_vm0, %v612_v60 }
 0x342   :  { %v1012_v61 = vpop.f32.mrb[4].mxu1 }
 0x343   :  { %867 = vst.msk [vmem:[#allocation10 + $0x18] sm:$0xff] %vm94_vm0, %v1012_v61  ;;  %v693_v62 = vpop.f32.mrb[5].mxu1 }
 0x344   :  { %866 = vst.msk [vmem:[#allocation10 + $0x10] sm:$0xff] %vm94_vm0, %v693_v62 }
 0x346   :  { %v1019_v63 = vpop.f32.mrb[6].mxu0 }
 0x347   :  { %869 = vst.msk [vmem:[#allocation10 + $0x28] sm:$0xff] %vm94_vm0, %v1019_v63  ;;  %v774_v0 = vpop.f32.mrb[7].mxu0 }
 0x348   :  { %868 = vst.msk [vmem:[#allocation10 + $0x20] sm:$0xff] %vm94_vm0, %v774_v0 }
 0x349   :  { %v1026_v1 = vpop.f32.mrb[6].mxu1 }
 0x34a   :  { %871 = vst.msk [vmem:[#allocation10 + $0x38] sm:$0xff] %vm94_vm0, %v1026_v1  ;;  %v855_v2 = vpop.f32.mrb[7].mxu1 }
 0x34b   :  { %870 = vst.msk [vmem:[#allocation10 + $0x30] sm:$0xff] %vm94_vm0, %v855_v2 }
 0x34c   :  { %1228 = shalt.err (!%p1225_p2)
}
 0x34d   :  { %s1229_s7 = scalar_lea.hbm %s1485_s4, 1024 }
 0x34e   :  { %p1230_p3 = scmp.ne.s32.totalorder %s1485_s4, %s1229_s7  ;;  %p1233_p4 = scmp.lt.u32.totalorder %s1229_s7, %s1485_s4 }
 0x350   :  { %p1235_p5 = pnand %p1233_p4, %p1230_p3 }
 0x352   :  { %1238 = shalt.err (!%p1235_p5)
}
 0x353   :  { %891 = dma.vmem_to_hbm [thread:$0]  %s886_s29, 1024, %s1485_s4, [#allocation4], %s1251_s30, %s1251_s30, %s1252_s6  }
 0x354   :  { %1245 = dma.done.wait [#allocation4], 1024  }
 0x355   :  { %1246 = vsyncadd [#allocation4], 4294966272 }
 0x356   :  { %1247 = dma.done.wait [#allocation12], 1024  }
 0x357   :  { %1248 = vsyncadd [#allocation12], 4294966272 }
 0x358   :  { %910 = vsyncpa [#allocation3], 1 }
 0x359   :  { %911 = vsyncpa [#allocation6], 1 }
 0x35a   :  { %912 = vsyncpa [#allocation9], 1 }
 0x35b   :  { %913 = vsyncpa [#allocation4], 1 }
 0x35c   :  { %914 = vsyncpa [#allocation12], 1 }

</bundles_post_ra>
